<compile_context>
chip_gen: v7x
topology: tpu7x:2x2x1
jax: 0.10.0
libtpu: 0.0.40
codegen_flags: <defaults>
</compile_context>

<pallas_src>
from functools import partial

import jax
import jax.numpy as jnp
from jax.experimental import pallas as pl
from jax.experimental.pallas import tpu as pltpu


def esm_decoder_mlp_kernel(x_ref,
                           w1_ref, b1_ref,
                           w2_ref, b2_ref,
                           w3_ref, b3_ref,
                           w4p_ref, b4p_ref,
                           o_ref,
                           acc_ref,
                           *, seq_len, seq_block, mask_tail, inv_s, mm_dtype):
    s = pl.program_id(1)

    # --- init accumulator at the start of every sequence sweep --------------
    @pl.when(s == 0)
    def _():
        acc_ref[...] = jnp.zeros_like(acc_ref)

    # --- accumulate the per-batch-row sequence sum in f32 -------------------
    xb = x_ref[...].astype(jnp.float32)                       # (TB, TS, E)
    if mask_tail:
        # Ragged final seq chunk: rows >= seq_len hold unspecified data from
        # the partial block; select (don't multiply) so NaN/Inf cannot leak.
        pos = s * seq_block + jax.lax.broadcasted_iota(
            jnp.int32, (1, seq_block, 1), 1)
        xb = jnp.where(pos < seq_len, xb, 0.0)
    acc_ref[...] += jnp.sum(xb, axis=1)                       # (TB, E)

    # --- MLP only on the last sequence chunk --------------------------------
    @pl.when(s == pl.num_programs(1) - 1)
    def _():
        xm = acc_ref[...] * inv_s                              # mean over true S

        h = jnp.dot(xm.astype(mm_dtype), w1_ref[...].astype(mm_dtype),
                    preferred_element_type=jnp.float32) + b1_ref[...]
        h = jnp.maximum(h, 0.0)

        h = jnp.dot(h.astype(mm_dtype), w2_ref[...].astype(mm_dtype),
                    preferred_element_type=jnp.float32) + b2_ref[...]
        h = jnp.maximum(h, 0.0)

        h = jnp.dot(h.astype(mm_dtype), w3_ref[...].astype(mm_dtype),
                    preferred_element_type=jnp.float32) + b3_ref[...]
        h = jnp.maximum(h, 0.0)

        # Final Linear(H,1) as a (TB,H)@(H,128) MXU matmul against w4 padded to
        # 128 output lanes (column 0 real) -> lane-dense (TB,128) store.
        out = jnp.dot(h.astype(mm_dtype), w4p_ref[...].astype(mm_dtype),
                      preferred_element_type=jnp.float32) + b4p_ref[...]
        o_ref[...] = out.astype(o_ref.dtype)


def _round_up(x, m):
    return (x + m - 1) // m * m


def _vmem_capacity_bytes():
    default = 64 * 1024 * 1024            # conservative fallback: v7x physical
    try:
        cap = getattr(pltpu.get_tpu_info(), "vmem_capacity_bytes", None)
        return int(cap) if cap else default
    except Exception:
        return default


def esm_decoder_mlp(x, params, *, tb=None, ts=None):
    """x: (B, S, E) float32 or bfloat16.  params: w* (in,out), b* (1,out), w4 (H,1), b4 (1,1)."""
    B, S, E = x.shape
    H = params["w1"].shape[1]
    x_itemsize = jnp.dtype(x.dtype).itemsize

    cap = _vmem_capacity_bytes()
    budget = min(int(cap * 0.6), 48 * 1024 * 1024)      # total-residency target
    # Params are pinned (constant index maps) but double-buffered by default.
    weights_bytes = 2 * 4 * (E * H + H + 2 * (H * H + H) + H * 128 + 128)

    # Sequence chunk: balanced chunks around 256 rows, multiple of 8 (or = S).
    if ts is None:
        n_chunks = -(-S // 256)
        ts = _round_up(-(-S // n_chunks), 8)
    ts = S if ts >= S else max(8, (ts // 8) * 8)

    # Batch tile: largest multiple of 8 whose residency fits the budget; shrink
    # ts first if even tb=8 would overshoot (fixes the old VMEM overshoot).
    if tb is None:
        while True:
            per_row = 2 * ts * E * x_itemsize + 2 * 128 * 4 + E * 4
            rows = max(0, (budget - weights_bytes) // per_row)
            cand = (rows // 8) * 8
            if cand >= 8 or ts <= 8 or ts >= S:
                break
            ts = max(8, (ts // 16) * 8)                 # halve ts, keep mult-of-8
        tb = max(8, min(cand, 1024))
    tb = B if tb >= B else max(8, (tb // 8) * 8)

    # v7x megacore: keep >= 2 "parallel" batch tiles when B allows it.
    if B > 8 and -(-B // tb) < 2:
        tb2 = _round_up(-(-B // 2), 8)
        tb = B if tb2 >= B else tb2

    n_b = pl.cdiv(B, tb)
    n_s = pl.cdiv(S, ts)
    mask_tail = (S % ts) != 0

    # bf16 matmul operands for production-sized layers (MXU-native); the
    # sequence mean and all accumulations stay in f32 either way.
    mm_dtype = jnp.bfloat16 if (E >= 512 and H >= 128) else jnp.float32

    # Final Linear(H,1) zero-padded to 128 output lanes -> lane-dense store.
    w4p = jnp.zeros((H, 128), jnp.float32).at[:, 0].set(params["w4"][:, 0])
    b4p = jnp.zeros((1, 128), jnp.float32).at[0, 0].set(params["b4"][0, 0])

    resid = (2 * tb * ts * E * x_itemsize + 2 * tb * 128 * 4
             + tb * E * 4 + weights_bytes)
    vmem_limit = int(min(cap * 0.85, max(32 * 1024 * 1024, resid * 1.25)))

    kernel = partial(esm_decoder_mlp_kernel,
                     seq_len=S, seq_block=ts, mask_tail=bool(mask_tail),
                     inv_s=1.0 / S, mm_dtype=mm_dtype)

    out = pl.pallas_call(
        kernel,
        out_shape=jax.ShapeDtypeStruct((B, 128), jnp.float32),
        grid_spec=pltpu.PrefetchScalarGridSpec(
            num_scalar_prefetch=0,
            grid=(n_b, n_s),
            in_specs=[
                pl.BlockSpec((tb, ts, E), lambda i, s: (i, s, 0)),      # x streamed
                pl.BlockSpec(params["w1"].shape, lambda i, s: (0, 0)),  # params pinned
                pl.BlockSpec(params["b1"].shape, lambda i, s: (0, 0)),
                pl.BlockSpec(params["w2"].shape, lambda i, s: (0, 0)),
                pl.BlockSpec(params["b2"].shape, lambda i, s: (0, 0)),
                pl.BlockSpec(params["w3"].shape, lambda i, s: (0, 0)),
                pl.BlockSpec(params["b3"].shape, lambda i, s: (0, 0)),
                pl.BlockSpec(w4p.shape, lambda i, s: (0, 0)),
                pl.BlockSpec(b4p.shape, lambda i, s: (0, 0)),
            ],
            out_specs=pl.BlockSpec((tb, 128), lambda i, s: (i, 0)),
            scratch_shapes=[pltpu.VMEM((tb, E), jnp.float32)],
        ),
        compiler_params=pltpu.CompilerParams(
            dimension_semantics=("parallel", "arbitrary"),
            vmem_limit_bytes=vmem_limit),
    )(x,
      params["w1"], params["b1"],
      params["w2"], params["b2"],
      params["w3"], params["b3"],
      w4p, b4p)

    return out[:, :1]


def init_params(key, embed_size, hidden_size):
    """Deterministic synthetic parameters (PyTorch-Linear-like uniform init)."""
    ks = jax.random.split(key, 8)

    def linear(kw, kb, fan_in, fan_out):
        bound = 1.0 / jnp.sqrt(fan_in)
        w = jax.random.uniform(kw, (fan_in, fan_out), jnp.float32, -bound, bound)
        b = jax.random.uniform(kb, (1, fan_out), jnp.float32, -bound, bound)
        return w, b

    w1, b1 = linear(ks[0], ks[1], embed_size, hidden_size)
    w2, b2 = linear(ks[2], ks[3], hidden_size, hidden_size)
    w3, b3 = linear(ks[4], ks[5], hidden_size, hidden_size)
    w4, b4 = linear(ks[6], ks[7], hidden_size, 1)
    return dict(w1=w1, b1=b1, w2=w2, b2=b2, w3=w3, b3=b3, w4=w4, b4=b4)


def _reference(x, params):
    xm = x.mean(axis=1)
    h = jnp.maximum(xm @ params["w1"] + params["b1"], 0.0)
    h = jnp.maximum(h @ params["w2"] + params["b2"], 0.0)
    h = jnp.maximum(h @ params["w3"] + params["b3"], 0.0)
    return h @ params["w4"] + params["b4"]


if __name__ == "__main__":
    key = jax.random.PRNGKey(0)
    k_x, k_p, k_x2, k_p2 = jax.random.split(key, 4)

    # Check 1: small shapes consistent with the module forward (B, S, E), f32.
    B, S, E, H = 2, 8, 32, 32
    x = jax.random.normal(k_x, (B, S, E), dtype=jnp.float32)
    params = init_params(k_p, embed_size=E, hidden_size=H)

    out = jax.block_until_ready(esm_decoder_mlp(x, params))
    ref = _reference(x, params)
    assert out.shape == (B, 1), out.shape
    assert jnp.allclose(out, ref, atol=1e-4, rtol=1e-4), (out, ref)

    # Check 2: ragged batch/seq tiles (no wrapper-side padding) + bf16 streaming.
    B2, S2, E2, H2 = 20, 22, 64, 48
    x2 = jax.random.normal(k_x2, (B2, S2, E2), dtype=jnp.float32).astype(jnp.bfloat16)
    params2 = init_params(k_p2, embed_size=E2, hidden_size=H2)

    out2 = jax.block_until_ready(esm_decoder_mlp(x2, params2, tb=8, ts=8))
    ref2 = _reference(x2.astype(jnp.float32), params2)
    assert out2.shape == (B2, 1), out2.shape
    assert jnp.allclose(out2, ref2, atol=1e-3, rtol=1e-3), (out2, ref2)

    print("KERNEL_OK")
</pallas_src>

<mosaic_0001>
module attributes {stable_mosaic.version = 11 : i64} {
  func.func @esm_decoder_mlp_kernel(%arg0: i32, %arg1: i32, %arg2: memref<2x8x32xf32, #tpu.memory_space<vmem>>, %arg3: memref<32x32xf32, #tpu.memory_space<vmem>>, %arg4: memref<1x32xf32, #tpu.memory_space<vmem>>, %arg5: memref<32x32xf32, #tpu.memory_space<vmem>>, %arg6: memref<1x32xf32, #tpu.memory_space<vmem>>, %arg7: memref<32x32xf32, #tpu.memory_space<vmem>>, %arg8: memref<1x32xf32, #tpu.memory_space<vmem>>, %arg9: memref<32x128xf32, #tpu.memory_space<vmem>>, %arg10: memref<1x128xf32, #tpu.memory_space<vmem>>, %arg11: memref<2x128xf32, #tpu.memory_space<vmem>>, %arg12: memref<2x32xf32, #tpu.memory_space<vmem>>) attributes {dimension_semantics = [#tpu.dimension_semantics<parallel>, #tpu.dimension_semantics<arbitrary>], iteration_bounds = array<i64: 1, 1>, scalar_prefetch = 0 : i64, scratch_operands = 1 : i64, tpu.core_type = #tpu.core_type<tc>, window_params = [{transform_indices = @transform_0, window_bounds = array<i64: 2, 8, 32>}, {pipeline_mode = #tpu.pipeline_mode<synchronous>, transform_indices = @transform_1, window_bounds = array<i64: 32, 32>}, {pipeline_mode = #tpu.pipeline_mode<synchronous>, transform_indices = @transform_2, window_bounds = array<i64: 1, 32>}, {pipeline_mode = #tpu.pipeline_mode<synchronous>, transform_indices = @transform_3, window_bounds = array<i64: 32, 32>}, {pipeline_mode = #tpu.pipeline_mode<synchronous>, transform_indices = @transform_4, window_bounds = array<i64: 1, 32>}, {pipeline_mode = #tpu.pipeline_mode<synchronous>, transform_indices = @transform_5, window_bounds = array<i64: 32, 32>}, {pipeline_mode = #tpu.pipeline_mode<synchronous>, transform_indices = @transform_6, window_bounds = array<i64: 1, 32>}, {pipeline_mode = #tpu.pipeline_mode<synchronous>, transform_indices = @transform_7, window_bounds = array<i64: 32, 128>}, {pipeline_mode = #tpu.pipeline_mode<synchronous>, transform_indices = @transform_8, window_bounds = array<i64: 1, 128>}, {transform_indices = @transform_9, window_bounds = array<i64: 2, 128>}]} {
    %c0_i32 = arith.constant 0 : i32
    %0 = arith.cmpi eq, %arg1, %c0_i32 : i32
    %1 = arith.extui %0 : i1 to i32
    %c0_i32_0 = arith.constant 0 : i32
    %2 = arith.cmpi ne, %1, %c0_i32_0 : i32
    scf.if %2 {
      %cst_9 = arith.constant 0.000000e+00 : f32
      %11 = vector.broadcast %cst_9 : f32 to vector<2x32xf32>
      %c0_10 = arith.constant 0 : index
      %c0_11 = arith.constant 0 : index
      %12 = vector.load %arg12[%c0_10, %c0_11] : memref<2x32xf32, #tpu.memory_space<vmem>>, vector<2x32xf32>
      tpu.vector_store %arg12[%c0_10, %c0_11], %11 {strides = array<i32>} : memref<2x32xf32, #tpu.memory_space<vmem>>, vector<2x32xf32>,
    } else {
    }
    %c0 = arith.constant 0 : index
    %c0_1 = arith.constant 0 : index
    %c0_2 = arith.constant 0 : index
    %3 = vector.load %arg2[%c0, %c0_1, %c0_2] : memref<2x8x32xf32, #tpu.memory_space<vmem>>, vector<2x8x32xf32>
    %c0_3 = arith.constant 0 : index
    %c0_4 = arith.constant 0 : index
    %4 = vector.load %arg12[%c0_3, %c0_4] : memref<2x32xf32, #tpu.memory_space<vmem>>, vector<2x32xf32>
    %cst = arith.constant dense<0.000000e+00> : vector<2x32xf32>
    %5 = vector.multi_reduction <add>, %3, %cst [1] : vector<2x8x32xf32> to vector<2x32xf32>
    %6 = arith.addf %4, %5 : vector<2x32xf32>
    %c0_5 = arith.constant 0 : index
    %c0_6 = arith.constant 0 : index
    %7 = vector.load %arg12[%c0_5, %c0_6] : memref<2x32xf32, #tpu.memory_space<vmem>>, vector<2x32xf32>
    tpu.vector_store %arg12[%c0_5, %c0_6], %6 {strides = array<i32>} : memref<2x32xf32, #tpu.memory_space<vmem>>, vector<2x32xf32>,
    %c0_i32_7 = arith.constant 0 : i32
    %8 = arith.cmpi eq, %arg1, %c0_i32_7 : i32
    %9 = arith.extui %8 : i1 to i32
    %c0_i32_8 = arith.constant 0 : i32
    %10 = arith.cmpi ne, %9, %c0_i32_8 : i32
    scf.if %10 {
      %c0_9 = arith.constant 0 : index
      %c0_10 = arith.constant 0 : index
      %11 = vector.load %arg12[%c0_9, %c0_10] : memref<2x32xf32, #tpu.memory_space<vmem>>, vector<2x32xf32>
      %cst_11 = arith.constant 1.250000e-01 : f32
      %12 = vector.broadcast %cst_11 : f32 to vector<2x32xf32>
      %13 = arith.mulf %11, %12 : vector<2x32xf32>
      %c0_12 = arith.constant 0 : index
      %c0_13 = arith.constant 0 : index
      %14 = vector.load %arg3[%c0_12, %c0_13] : memref<32x32xf32, #tpu.memory_space<vmem>>, vector<32x32xf32>
      %cst_14 = arith.constant dense<0.000000e+00> : vector<2x32xf32>
      %15 = tpu.matmul %13, %14, %cst_14 {dimension_numbers = #tpu.dot_dimension_numbers<[1], [0], [0], [1], [0, 0, 1, 1], [], []>} : vector<2x32xf32>, vector<32x32xf32>, vector<2x32xf32> -> vector<2x32xf32>
      %c0_15 = arith.constant 0 : index
      %c0_16 = arith.constant 0 : index
      %16 = vector.load %arg4[%c0_15, %c0_16] : memref<1x32xf32, #tpu.memory_space<vmem>>, vector<1x32xf32>
      %17 = vector.broadcast %16 : vector<1x32xf32> to vector<2x32xf32>
      %18 = arith.addf %15, %17 : vector<2x32xf32>
      %cst_17 = arith.constant 0.000000e+00 : f32
      %19 = vector.broadcast %cst_17 : f32 to vector<2x32xf32>
      %20 = arith.maximumf %18, %19 : vector<2x32xf32>
      %c0_18 = arith.constant 0 : index
      %c0_19 = arith.constant 0 : index
      %21 = vector.load %arg5[%c0_18, %c0_19] : memref<32x32xf32, #tpu.memory_space<vmem>>, vector<32x32xf32>
      %cst_20 = arith.constant dense<0.000000e+00> : vector<2x32xf32>
      %22 = tpu.matmul %20, %21, %cst_20 {dimension_numbers = #tpu.dot_dimension_numbers<[1], [0], [0], [1], [0, 0, 1, 1], [], []>} : vector<2x32xf32>, vector<32x32xf32>, vector<2x32xf32> -> vector<2x32xf32>
      %c0_21 = arith.constant 0 : index
      %c0_22 = arith.constant 0 : index
      %23 = vector.load %arg6[%c0_21, %c0_22] : memref<1x32xf32, #tpu.memory_space<vmem>>, vector<1x32xf32>
      %24 = vector.broadcast %23 : vector<1x32xf32> to vector<2x32xf32>
      %25 = arith.addf %22, %24 : vector<2x32xf32>
      %cst_23 = arith.constant 0.000000e+00 : f32
      %26 = vector.broadcast %cst_23 : f32 to vector<2x32xf32>
      %27 = arith.maximumf %25, %26 : vector<2x32xf32>
      %c0_24 = arith.constant 0 : index
      %c0_25 = arith.constant 0 : index
      %28 = vector.load %arg7[%c0_24, %c0_25] : memref<32x32xf32, #tpu.memory_space<vmem>>, vector<32x32xf32>
      %cst_26 = arith.constant dense<0.000000e+00> : vector<2x32xf32>
      %29 = tpu.matmul %27, %28, %cst_26 {dimension_numbers = #tpu.dot_dimension_numbers<[1], [0], [0], [1], [0, 0, 1, 1], [], []>} : vector<2x32xf32>, vector<32x32xf32>, vector<2x32xf32> -> vector<2x32xf32>
      %c0_27 = arith.constant 0 : index
      %c0_28 = arith.constant 0 : index
      %30 = vector.load %arg8[%c0_27, %c0_28] : memref<1x32xf32, #tpu.memory_space<vmem>>, vector<1x32xf32>
      %31 = vector.broadcast %30 : vector<1x32xf32> to vector<2x32xf32>
      %32 = arith.addf %29, %31 : vector<2x32xf32>
      %cst_29 = arith.constant 0.000000e+00 : f32
      %33 = vector.broadcast %cst_29 : f32 to vector<2x32xf32>
      %34 = arith.maximumf %32, %33 : vector<2x32xf32>
      %c0_30 = arith.constant 0 : index
      %c0_31 = arith.constant 0 : index
      %35 = vector.load %arg9[%c0_30, %c0_31] : memref<32x128xf32, #tpu.memory_space<vmem>>, vector<32x128xf32>
      %cst_32 = arith.constant dense<0.000000e+00> : vector<2x128xf32>
      %36 = tpu.matmul %34, %35, %cst_32 {dimension_numbers = #tpu.dot_dimension_numbers<[1], [0], [0], [1], [0, 0, 1, 1], [], []>} : vector<2x32xf32>, vector<32x128xf32>, vector<2x128xf32> -> vector<2x128xf32>
      %c0_33 = arith.constant 0 : index
      %c0_34 = arith.constant 0 : index
      %37 = vector.load %arg10[%c0_33, %c0_34] : memref<1x128xf32, #tpu.memory_space<vmem>>, vector<1x128xf32>
      %38 = vector.broadcast %37 : vector<1x128xf32> to vector<2x128xf32>
      %39 = arith.addf %36, %38 : vector<2x128xf32>
      %c0_35 = arith.constant 0 : index
      %c0_36 = arith.constant 0 : index
      %40 = vector.load %arg11[%c0_35, %c0_36] : memref<2x128xf32, #tpu.memory_space<vmem>>, vector<2x128xf32>
      tpu.vector_store %arg11[%c0_35, %c0_36], %39 {strides = array<i32>} : memref<2x128xf32, #tpu.memory_space<vmem>>, vector<2x128xf32>,
    } else {
    }
    return
  }
  func.func @transform_0(%arg0: i32, %arg1: i32) -> (i32, i32, i32) {
    %c0_i32 = arith.constant 0 : i32
    %c0_i32_0 = arith.constant 0 : i32
    return %arg0, %arg1, %c0_i32 : i32, i32, i32
  }
  func.func @transform_1(%arg0: i32, %arg1: i32) -> (i32, i32) {
    %c0_i32 = arith.constant 0 : i32
    %c0_i32_0 = arith.constant 0 : i32
    %c0_i32_1 = arith.constant 0 : i32
    return %c0_i32, %c0_i32_0 : i32, i32
  }
  func.func @transform_2(%arg0: i32, %arg1: i32) -> (i32, i32) {
    %c0_i32 = arith.constant 0 : i32
    %c0_i32_0 = arith.constant 0 : i32
    %c0_i32_1 = arith.constant 0 : i32
    return %c0_i32, %c0_i32_0 : i32, i32
  }
  func.func @transform_3(%arg0: i32, %arg1: i32) -> (i32, i32) {
    %c0_i32 = arith.constant 0 : i32
    %c0_i32_0 = arith.constant 0 : i32
    %c0_i32_1 = arith.constant 0 : i32
    return %c0_i32, %c0_i32_0 : i32, i32
  }
  func.func @transform_4(%arg0: i32, %arg1: i32) -> (i32, i32) {
    %c0_i32 = arith.constant 0 : i32
    %c0_i32_0 = arith.constant 0 : i32
    %c0_i32_1 = arith.constant 0 : i32
    return %c0_i32, %c0_i32_0 : i32, i32
  }
  func.func @transform_5(%arg0: i32, %arg1: i32) -> (i32, i32) {
    %c0_i32 = arith.constant 0 : i32
    %c0_i32_0 = arith.constant 0 : i32
    %c0_i32_1 = arith.constant 0 : i32
    return %c0_i32, %c0_i32_0 : i32, i32
  }
  func.func @transform_6(%arg0: i32, %arg1: i32) -> (i32, i32) {
    %c0_i32 = arith.constant 0 : i32
    %c0_i32_0 = arith.constant 0 : i32
    %c0_i32_1 = arith.constant 0 : i32
    return %c0_i32, %c0_i32_0 : i32, i32
  }
  func.func @transform_7(%arg0: i32, %arg1: i32) -> (i32, i32) {
    %c0_i32 = arith.constant 0 : i32
    %c0_i32_0 = arith.constant 0 : i32
    %c0_i32_1 = arith.constant 0 : i32
    return %c0_i32, %c0_i32_0 : i32, i32
  }
  func.func @transform_8(%arg0: i32, %arg1: i32) -> (i32, i32) {
    %c0_i32 = arith.constant 0 : i32
    %c0_i32_0 = arith.constant 0 : i32
    %c0_i32_1 = arith.constant 0 : i32
    return %c0_i32, %c0_i32_0 : i32, i32
  }
  func.func @transform_9(%arg0: i32, %arg1: i32) -> (i32, i32) {
    %c0_i32 = arith.constant 0 : i32
    %c0_i32_0 = arith.constant 0 : i32
    return %arg0, %c0_i32 : i32, i32
  }
}

</mosaic_0001>

<bundles_post_ra>
// kernel: tpu_custom_call.1
= control target key start
LH: loop header
LB: loop body
LE: loop exit
PB: predicated region body
PF: predicated region fallthrough
CT: control target
= control target key end

     0   :  { %14 = vsyncpa [#allocation4], 0  ;;  %s941_s0 = inlined_call_operand.hbm [shape: f32[2,8,32], index: 0, kind: input, shape index: {}]   ;;  %s942_s1 = inlined_call_operand.hbm [shape: f32[32,32], index: 1, kind: input, shape index: {}]   ;;  %s943_s2 = inlined_call_operand.vmem [shape: f32[1,32], index: 2, kind: input, shape index: {}]   ;;  %s944_s3 = inlined_call_operand.hbm [shape: f32[32,32], index: 3, kind: input, shape index: {}]   ;;  %s945_s4 = inlined_call_operand.vmem [shape: f32[1,32], index: 4, kind: input, shape index: {}]   ;;  %s946_s5 = inlined_call_operand.hbm [shape: f32[32,32], index: 5, kind: input, shape index: {}]   ;;  %s947_s6 = inlined_call_operand.vmem [shape: f32[1,32], index: 6, kind: input, shape index: {}]   ;;  %s948_s7 = inlined_call_operand.hbm [shape: f32[32,128], index: 7, kind: input, shape index: {}]   ;;  %s949_s8 = inlined_call_operand.vmem [shape: f32[1,128], index: 8, kind: input, shape index: {}]   ;;  %s950_s9 = inlined_call_operand.hbm [shape: f32[2,128], index: 9, kind: output, shape index: {}]  }
   0x1   :  { %15 = vsyncpa [#allocation7], 0 }
   0x2   :  { %16 = vsyncpa [#allocation10], 0 }
   0x3   :  { %17 = vsyncpa [#allocation5], 0  ;;  %s742_s30 = smov [#allocation6]   ;;  %s743_s11 = smov [#allocation9]  }
   0x4   :  { %s35_s10 = sshll.u32 %s742_s30, 4  ;;  %s63_s12 = sshll.u32 %s743_s11, 4  ;;  %s36_s10 = int_to_ptr.vmem [resolvable:$true] %s35_s10  ;;  %s803_s12 = int_to_ptr.vmem [resolvable:$true] %s63_s12 }
   0x5   :  { %s602_s15 = scalar_lea.hbm %s942_s1, 512 }
   0x6   :  { %p603_p0 = scmp.ne.s32.totalorder %s942_s1, %s602_s15  ;;  %p606_p1 = scmp.lt.u32.totalorder %s602_s15, %s942_s1 }
   0x8   :  { %p608_p2 = pnand %p606_p1, %p603_p0 }
   0xa   :  { %611 = shalt.err (!%p608_p2)
}
   0xb   :  { %s612_s20 = scalar_lea.vmem %s36_s10, 512  ;;  %p617_p4 = scmp.lt.s32.totalorder %s36_s10, %s36_s10 }
   0xc   :  { %p613_p3 = scmp.ne.s32.totalorder %s36_s10, %s612_s20  ;;  %p618_p5 = scmp.lt.s32.totalorder %s612_s20, %s612_s20 }
   0xe   :  { %p619_p6 = por %p618_p5, %p617_p4 }
  0x10   :  { %p620_p7 = pnand %p619_p6, %p613_p3 }
  0x12   :  { %623 = shalt.err (!%p620_p7)
}
  0x13   :  { %s744_s21 = smov 128   ;;  %s745_s22 = smov 8  }
  0x14   :  { %41 = dma.hbm_to_vmem [thread:$0]  %s942_s1, 512, %s36_s10, [#allocation7], %s744_s21, %s744_s21, %s745_s22  }
  0x15   :  { %s624_s27 = scalar_lea.hbm %s946_s5, 512 }
  0x16   :  { %p625_p8 = scmp.ne.s32.totalorder %s946_s5, %s624_s27  ;;  %p628_p9 = scmp.lt.u32.totalorder %s624_s27, %s946_s5 }
  0x18   :  { %p630_p10 = pnand %p628_p9, %p625_p8 }
  0x1a   :  { %633 = shalt.err (!%p630_p10)
}
  0x1b   :  { %s634_s13 = scalar_lea.vmem %s803_s12, 512  ;;  %p639_p12 = scmp.lt.s32.totalorder %s803_s12, %s803_s12 }
  0x1c   :  { %p635_p11 = scmp.ne.s32.totalorder %s803_s12, %s634_s13  ;;  %p640_p13 = scmp.lt.s32.totalorder %s634_s13, %s634_s13 }
  0x1e   :  { %p641_p0 = por %p640_p13, %p639_p12 }
  0x20   :  { %p642_p1 = pnand %p641_p0, %p635_p11 }
  0x22   :  { %645 = shalt.err (!%p642_p1)
}
  0x23   :  { %69 = dma.hbm_to_vmem [thread:$0]  %s946_s5, 512, %s803_s12, [#allocation10], %s744_s21, %s744_s21, %s745_s22  }
  0x24   :  { %s746_s14 = smov [#allocation3]   ;;  %s747_s16 = smov [#allocation8]  }
  0x25   :  { %s23_s15 = sshll.u32 %s746_s14, 4  ;;  %s49_s17 = sshll.u32 %s747_s16, 4  ;;  %s24_s15 = int_to_ptr.vmem [resolvable:$true] %s23_s15  ;;  %s840_s17 = int_to_ptr.vmem [resolvable:$true] %s49_s17 }
  0x26   :  { %s646_s20 = scalar_lea.hbm %s941_s0, 256 }
  0x27   :  { %p647_p2 = scmp.ne.s32.totalorder %s941_s0, %s646_s20  ;;  %p650_p3 = scmp.lt.u32.totalorder %s646_s20, %s941_s0 }
  0x29   :  { %p652_p4 = pnand %p650_p3, %p647_p2 }
  0x2b   :  { %655 = shalt.err (!%p652_p4)
}
  0x2c   :  { %s656_s5 = scalar_lea.vmem %s24_s15, 256  ;;  %p661_p6 = scmp.lt.s32.totalorder %s24_s15, %s24_s15 }
  0x2d   :  { %p657_p5 = scmp.ne.s32.totalorder %s24_s15, %s656_s5  ;;  %p662_p7 = scmp.lt.s32.totalorder %s656_s5, %s656_s5 }
  0x2f   :  { %p663_p8 = por %p662_p7, %p661_p6 }
  0x31   :  { %p664_p9 = pnand %p663_p8, %p657_p5 }
  0x33   :  { %667 = shalt.err (!%p664_p9)
}
  0x34   :  { %29 = dma.hbm_to_vmem [thread:$0]  %s941_s0, 256, %s24_s15, [#allocation4], %s744_s21, %s744_s21, %s745_s22  }
  0x35   :  { %s668_s30 = scalar_lea.hbm %s944_s3, 512 }
  0x36   :  { %p669_p10 = scmp.ne.s32.totalorder %s944_s3, %s668_s30  ;;  %p672_p11 = scmp.lt.u32.totalorder %s668_s30, %s944_s3 }
  0x38   :  { %p674_p12 = pnand %p672_p11, %p669_p10 }
  0x3a   :  { %677 = shalt.err (!%p674_p12)
}
  0x3b   :  { %s678_s14 = scalar_lea.vmem %s840_s17, 512  ;;  %p683_p0 = scmp.lt.s32.totalorder %s840_s17, %s840_s17 }
  0x3c   :  { %p679_p13 = scmp.ne.s32.totalorder %s840_s17, %s678_s14  ;;  %p684_p1 = scmp.lt.s32.totalorder %s678_s14, %s678_s14 }
  0x3e   :  { %p685_p2 = por %p684_p1, %p683_p0 }
  0x40   :  { %p686_p3 = pnand %p685_p2, %p679_p13 }
  0x42   :  { %689 = shalt.err (!%p686_p3)
}
  0x43   :  { %55 = dma.hbm_to_vmem [thread:$0]  %s944_s3, 512, %s840_s17, [#allocation7], %s744_s21, %s744_s21, %s745_s22  }
  0x44   :  { %s748_s16 = smov [#allocation11]   ;;  %s690_s23 = scalar_lea.hbm %s948_s7, 512 }
  0x45   :  { %s77_s18 = sshll.u32 %s748_s16, 4  ;;  %p691_p4 = scmp.ne.s32.totalorder %s948_s7, %s690_s23  ;;  %s78_s18 = int_to_ptr.vmem [resolvable:$true] %s77_s18 }
  0x46   :  { %p694_p5 = scmp.lt.u32.totalorder %s690_s23, %s948_s7 }
  0x48   :  { %p696_p6 = pnand %p694_p5, %p691_p4 }
  0x4a   :  { %699 = shalt.err (!%p696_p6)
}
  0x4b   :  { %s700_s12 = scalar_lea.vmem %s78_s18, 512  ;;  %p705_p8 = scmp.lt.s32.totalorder %s78_s18, %s78_s18 }
  0x4c   :  { %p701_p7 = scmp.ne.s32.totalorder %s78_s18, %s700_s12  ;;  %p706_p9 = scmp.lt.s32.totalorder %s700_s12, %s700_s12 }
  0x4e   :  { %p707_p10 = por %p706_p9, %p705_p8 }
  0x50   :  { %p708_p11 = pnand %p707_p10, %p701_p7 }
  0x52   :  { %711 = shalt.err (!%p708_p11)
}
  0x53   :  { %83 = dma.hbm_to_vmem [thread:$0]  %s948_s7, 512, %s78_s18, [#allocation10], %s744_s21, %s744_s21, %s745_s22  }
  0x54   :  { %734 = dma.done.wait [#allocation4], 256  }
  0x55   :  { %735 = vsyncadd [#allocation4], 4294967040 }
  0x56   :  { %736 = dma.done.wait [#allocation7], 1024  }
  0x57   :  { %737 = vsyncadd [#allocation7], 4294966272 }
  0x58   :  { %738 = dma.done.wait [#allocation10], 1024  }
  0x59   :  { %739 = vsyncadd [#allocation10], 4294966272  ;;  %vm105_vm0 = vcmask 254976   ;;  %v749_v0 = vmov 0.0|0.0   ;;  %v750_v1 = vmov 0.0   ;;  %vm751_vm1 = vmmov 0  }
  0x5a   :  { %567 = vmatprep.subr.bf16.mxu0 %v749_v0  ;;  %106 = vst.msk [vmem:[#allocation2] sm:$0x3] %vm105_vm0, %v750_v1  ;;  %531 = vmatprep.mubr.msk.f32.mxu0 %vm751_vm1, %v750_v1  ;;  %vm110_vm2 = vcmask 261120   ;;  %v138_v2 = vld [vmem:[#allocation6] sm:$0xff]  ;;  %v139_v3 = vld [vmem:[#allocation6 + $0x8] sm:$0xff]  ;;  %v140_v4 = vld [vmem:[#allocation6 + $0x10] sm:$0xff] }
  0x5b   :  { %573 = vmatprep.subr.bf16.mxu1 %v749_v0  ;;  %542 = vmatprep.mubr.msk.f32.mxu1 %vm751_vm1, %v750_v1  ;;  %v568_v5 = vpack.c.bf16 %v139_v3, %v138_v2  ;;  %v141_v6 = vld [vmem:[#allocation6 + $0x18] sm:$0xff]  ;;  %v107_v7 = vld [vmem:[#allocation3] sm:$0xff]  ;;  %v223_v11 = vld [vmem:[#allocation8] sm:$0xff]  ;;  %vm127_vm3 = vcmask 1041409   ;;  %s752_s30 = smov [#allocation12]  }
  0x5c   :  { %v108_v8 = vld [vmem:[#allocation3 + $0x8] sm:$0xff]  ;;  %v111_v9 = vsel %vm110_vm2, %v107_v7, 0.0  ;;  %v224_v12 = vld [vmem:[#allocation8 + $0x8] sm:$0xff]  ;;  %v571_v13 = vpack.c.bf16 %v141_v6, %v140_v4  ;;  %v225_v32 = vld [vmem:[#allocation8 + $0x10] sm:$0xff]  ;;  %s484_s11 = sshll.u32 %s752_s30, 4  ;;  %s485_s11 = int_to_ptr.vmem [resolvable:$true] %s484_s11 }
  0x5d   :  { %v118_v10 = vsel %vm110_vm2, %v108_v8, 0.0  ;;  %569 = vmatpush3.bf16.msra.mxu0 %v568_v5  ;;  %v112_v14 = vrot.slane %v111_v9, 4  ;;  %v574_v16 = vpack.c.bf16 %v224_v12, %v223_v11  ;;  %v226_v33 = vld [vmem:[#allocation8 + $0x18] sm:$0xff]  ;;  %v308_v35 = vld [vmem:[#allocation9] sm:$0xff]  ;;  %v309_v36 = vld [vmem:[#allocation9 + $0x8] sm:$0xff]  ;;  %s712_s13 = scalar_lea.vmem %s485_s11, 32  ;;  %p717_p13 = scmp.lt.s32.totalorder %s485_s11, %s485_s11 }
  0x5e   :  { %v119_v15 = vrot.slane %v118_v10, 4  ;;  %570 = vmatprep.subr.bf16.mxu0 %v749_v0  ;;  %v577_v34 = vpack.c.bf16 %v226_v33, %v225_v32  ;;  %v580_v37 = vpack.c.bf16 %v309_v36, %v308_v35  ;;  %v495_v38 = vld [vmem:[%s943_s2] ss:$0 sm:$0xff]  ;;  %v310_v43 = vld [vmem:[#allocation9 + $0x10] sm:$0xff]  ;;  %v311_v44 = vld [vmem:[#allocation9 + $0x18] sm:$0xff]  ;;  %p713_p12 = scmp.ne.s32.totalorder %s485_s11, %s712_s13  ;;  %p718_p0 = scmp.lt.s32.totalorder %s712_s13, %s712_s13 }
  0x5f   :  { %v113_v17 = vadd.f32 %v112_v14, %v111_v9  ;;  %575 = vmatpush3.bf16.msra.mxu1 %v574_v16  ;;  %v583_v45 = vpack.c.bf16 %v311_v44, %v310_v43  ;;  %v393_v46 = vld [vmem:[#allocation11] sm:$0xff]  ;;  %v394_v47 = vld [vmem:[#allocation11 + $0x8] sm:$0xff]  ;;  %v395_v54 = vld [vmem:[#allocation11 + $0x10] sm:$0xff] }
  0x60   :  { %v120_v18 = vadd.f32 %v119_v15, %v118_v10  ;;  %576 = vmatprep.subr.bf16.mxu1 %v749_v0  ;;  %v586_v48 = vpack.c.bf16 %v394_v47, %v393_v46  ;;  %v497_v49 = vld [vmem:[%s945_s4] ss:$0 sm:$0xff]  ;;  %v396_v55 = vld [vmem:[#allocation11 + $0x18] sm:$0xff]  ;;  %p719_p1 = por %p718_p0, %p717_p13 }
  0x61   :  { %572 = vmatpush3.bf16.msra.mxu0 %v571_v13  ;;  %v114_v19 = vrot.slane %v113_v17, 2  ;;  %v109_v25 = vld [vmem:[#allocation2] sm:$0x3]  ;;  %v589_v56 = vpack.c.bf16 %v396_v55, %v395_v54 }
  0x62   :  { %v121_v20 = vrot.slane %v120_v18, 2  ;;  %579 = vmatprep.subr.bf16.mxu0 %v749_v0  ;;  %v499_v57 = vld [vmem:[%s947_s6] ss:$0 sm:$0xff]  ;;  %p720_p2 = pnand %p719_p1, %p713_p12 }
  0x63   :  { %v115_v21 = vadd.f32 %v114_v19, %v113_v17  ;;  %578 = vmatpush3.bf16.msra.mxu1 %v577_v34  ;;  %v501_v62 = vld [vmem:[%s949_s8] ss:$0 sm:$0xff] }
  0x64   :  { %v122_v22 = vadd.f32 %v121_v20, %v120_v18  ;;  %585 = vmatprep.subr.bf16.mxu1 %v749_v0 }
  0x65   :  { %v116_v23 = vrot.slane %v115_v21, 1 }
  0x66   :  { %v123_v24 = vrot.slane %v122_v22, 1 }
  0x67   :  { %v117_v26 = vadd.f32 %v116_v23, %v115_v21 }
  0x68   :  { %v124_v27 = vadd.f32 %v123_v24, %v122_v22 }
  0x6a   :  { %v128_v28 = vsel %vm127_vm3, %v124_v27, %v117_v26 }
  0x6b   :  { %v130_v29 = vadd.f32 %v128_v28, %v109_v25 }
  0x6d   :  { %132 = vst.msk [vmem:[#allocation2] sm:$0x3] %vm105_vm0, %v130_v29 }
  0x74   :  { %v136_v30 = vld [vmem:[#allocation2] sm:$0x3] }
  0x75   :  { %v137_v31 = vmul.f32 0.125, %v136_v30 }
  0x77   :  { %532 = vmatmul.mubr.msk.f32.vlgmr.msra.gmra.mrb[0].mxu0 %vm110_vm2, %v137_v31 }
  0x78   :  { %553 = vmatprep.mubr.msk.f32.mxu0 %vm751_vm1, %v750_v1  ;;  %581 = vmatpush3.bf16.msra.mxu0 %v580_v37 }
  0x79   :  { %582 = vmatprep.subr.bf16.mxu0 %v749_v0 }
  0x7c   :  { %584 = vmatpush3.bf16.msra.mxu0 %v583_v45 }
 0x14a   :  { %v218_v39 = vpop.f32.mrb[0].mxu0 }
 0x14b   :  { %v219_v40 = vadd.f32 %v495_v38, %v218_v39  ;;  %v533_v41 = vpop.f32.mrb[1].mxu0 }
 0x14d   :  { %v222_v42 = vmax.f32 %v219_v40, 0.0 }
 0x14f   :  { %543 = vmatmul.mubr.msk.f32.vlgmr.msra.gmra.mrb[0].mxu1 %vm110_vm2, %v222_v42 }
 0x150   :  { %564 = vmatprep.mubr.msk.f32.mxu1 %vm751_vm1, %v750_v1  ;;  %587 = vmatpush3.bf16.msra.mxu1 %v586_v48 }
 0x151   :  { %588 = vmatprep.subr.bf16.mxu1 %v749_v0 }
 0x154   :  { %590 = vmatpush3.bf16.msra.mxu1 %v589_v56 }
 0x222   :  { %v303_v50 = vpop.f32.mrb[0].mxu1 }
 0x223   :  { %v304_v51 = vadd.f32 %v497_v49, %v303_v50  ;;  %v544_v52 = vpop.f32.mrb[1].mxu1 }
 0x225   :  { %v307_v53 = vmax.f32 %v304_v51, 0.0 }
 0x227   :  { %554 = vmatmul.mubr.msk.f32.vlgmr.msra.gmra.mrb[2].mxu0 %vm110_vm2, %v307_v53 }
 0x2fa   :  { %v388_v58 = vpop.f32.mrb[2].mxu0 }
 0x2fb   :  { %v389_v59 = vadd.f32 %v499_v57, %v388_v58  ;;  %v555_v60 = vpop.f32.mrb[3].mxu0 }
 0x2fd   :  { %v392_v61 = vmax.f32 %v389_v59, 0.0 }
 0x2ff   :  { %565 = vmatmul.mubr.msk.f32.vlgmr.msra.gmra.mrb[2].mxu1 %vm110_vm2, %v392_v61 }
 0x3d2   :  { %v473_v63 = vpop.f32.mrb[2].mxu1 }
 0x3d3   :  { %v474_v0 = vadd.f32 %v501_v62, %v473_v63  ;;  %v566_v1 = vpop.f32.mrb[3].mxu1 }
 0x3d5   :  { %477 = vst [vmem:[#allocation12] sm:$0x3] %v474_v0 }
 0x3d6   :  { %723 = shalt.err (!%p720_p2)
}
 0x3d7   :  { %s724_s10 = scalar_lea.hbm %s950_s9, 32 }
 0x3d8   :  { %p725_p3 = scmp.ne.s32.totalorder %s950_s9, %s724_s10  ;;  %p728_p4 = scmp.lt.u32.totalorder %s724_s10, %s950_s9 }
 0x3da   :  { %p730_p5 = pnand %p728_p4, %p725_p3 }
 0x3dc   :  { %733 = shalt.err (!%p730_p5)
}
 0x3dd   :  { %487 = dma.vmem_to_hbm [thread:$0]  %s485_s11, 32, %s950_s9, [#allocation5]  }
 0x3de   :  { %740 = dma.done.wait [#allocation5], 32  }
 0x3df   :  { %741 = vsyncadd [#allocation5], 4294967264 }
 0x3e0   :  { %491 = vsyncpa [#allocation4], 1 }
 0x3e1   :  { %492 = vsyncpa [#allocation7], 1 }
 0x3e2   :  { %493 = vsyncpa [#allocation10], 1 }
 0x3e3   :  { %494 = vsyncpa [#allocation5], 1 }

</bundles_post_ra>
